<compile_context>
chip_gen: v5e
topology: v5e:2x2
jax: 0.10.0
libtpu: 0.0.40
codegen_flags: <defaults>
</compile_context>

<pallas_src>
import functools

import jax
import jax.numpy as jnp
from jax.experimental import pallas as pl
from jax.experimental.pallas import tpu as pltpu


def _leaky_relu(x, slope=0.2):
    return jnp.where(x >= 0, x, slope * x)


# ----------------------------------------------------------------------------
# Fused kernel: build (C, TILE_M) features in VMEM, then run the 4-layer MLP.
# ----------------------------------------------------------------------------
def _pifu_kernel(feat_ref, light_ref, kp_ref, coords_ref,
                 w1_ref, b1_ref, w2_ref, b2_ref, w3_ref, b3_ref,
                 w4_ref, b4_ref, o_ref, *, kp_scale):
    tile_m = feat_ref.shape[-1]
    c2 = light_ref.shape[1]

    # ---- fused feature construction (channels on sublanes, pixels on lanes) --
    feat = feat_ref[0]                                          # (c1, TM)
    light = jnp.broadcast_to(light_ref[0], (c2, tile_m))        # (c2, TM)

    kp = kp_ref[0] * kp_scale                                   # (c3, 2) scaled
    x_key = kp[:, 1:2]                                          # (c3, 1) vs row
    y_key = kp[:, 0:1]                                          # (c3, 1) vs col
    coords = coords_ref[...]                                    # (2, TM)
    row = coords[0:1, :]                                        # (1, TM)
    col = coords[1:2, :]                                        # (1, TM)
    dist = jnp.sqrt((x_key - row) ** 2 + (y_key - col) ** 2)    # (c3, TM)

    x = jnp.concatenate([feat, light, dist], axis=0)            # (C, TM)

    # ---- fused 4-layer MLP: H = W @ X + b ------------------------------------
    h = jnp.dot(w1_ref[...], x, preferred_element_type=jnp.float32) + b1_ref[...]
    h = _leaky_relu(h)
    h = jnp.dot(w2_ref[...], h, preferred_element_type=jnp.float32) + b2_ref[...]
    h = _leaky_relu(h)
    h = jnp.dot(w3_ref[...], h, preferred_element_type=jnp.float32) + b3_ref[...]
    h = _leaky_relu(h)
    h = jnp.dot(w4_ref[...], h, preferred_element_type=jnp.float32) + b4_ref[...]
    o_ref[0] = jnp.tanh(h).astype(o_ref.dtype)                  # (3, TM) lane-dense


# ----------------------------------------------------------------------------
# Wrapper
# ----------------------------------------------------------------------------
def _choose_pixel_tile(hw, max_tile=2048):
    """Largest nice tile dividing h*w; fall back to the full extent; last resort pad."""
    for t in (2048, 1024, 512, 256, 128):
        if t <= max_tile and hw % t == 0:
            return t, hw
    if hw <= max_tile:
        return hw, hw                    # block == full dim, no (8,128) issue
    hw_pad = pl.cdiv(hw, 512) * 512      # rare fallback: pad pixel axis
    return 512, hw_pad


def pifu_forward(feature_map, global_lightcode, keypoint, params):
    b, c1, h, w = feature_map.shape
    _, c2 = global_lightcode.shape
    _, c3, _ = keypoint.shape
    hw = h * w

    w1, b1, w2, b2, w3, b3, w4, b4 = params
    cdim = w1.shape[1]          # = c1 + c2 + c3
    c_half = w3.shape[0]
    out_dim = w4.shape[0]       # 3

    tile_m, hw_pad = _choose_pixel_tile(hw)

    feat = feature_map.astype(jnp.float32).reshape(b, c1, hw)
    if hw_pad != hw:
        feat = jnp.pad(feat, ((0, 0), (0, 0), (0, hw_pad - hw)))

    light = global_lightcode.astype(jnp.float32).reshape(b, c2, 1)
    kp = keypoint.astype(jnp.float32)

    # Per-pixel (row, col) coordinates of the flattened row-major pixel index.
    pix = jnp.arange(hw_pad, dtype=jnp.int32)
    coords = jnp.stack([pix // w, pix % w]).astype(jnp.float32)     # (2, hw_pad)

    grid = (b, hw_pad // tile_m)

    kernel = functools.partial(_pifu_kernel, kp_scale=float(h))

    batch_tile = lambda bi, ti: (bi, 0, ti)
    batch_only = lambda bi, ti: (bi, 0, 0)
    tile_only = lambda bi, ti: (0, ti)
    const2 = lambda bi, ti: (0, 0)

    in_specs = [
        pl.BlockSpec((1, c1, tile_m), batch_tile),      # feature_map tile
        pl.BlockSpec((1, c2, 1), batch_only),           # light-code column
        pl.BlockSpec((1, c3, 2), batch_only),           # keypoints
        pl.BlockSpec((2, tile_m), tile_only),           # pixel (row, col) coords
        pl.BlockSpec((cdim, cdim), const2),             # w1
        pl.BlockSpec((cdim, 1), const2),                # b1
        pl.BlockSpec((cdim, cdim), const2),             # w2
        pl.BlockSpec((cdim, 1), const2),                # b2
        pl.BlockSpec((c_half, cdim), const2),           # w3
        pl.BlockSpec((c_half, 1), const2),              # b3
        pl.BlockSpec((out_dim, c_half), const2),        # w4
        pl.BlockSpec((out_dim, 1), const2),             # b4
    ]
    out_spec = pl.BlockSpec((1, out_dim, tile_m), batch_tile)

    out = pl.pallas_call(
        kernel,
        out_shape=jax.ShapeDtypeStruct((b, out_dim, hw_pad), jnp.float32),
        grid_spec=pltpu.PrefetchScalarGridSpec(
            num_scalar_prefetch=0,
            grid=grid,
            in_specs=in_specs,
            out_specs=out_spec,
        ),
        compiler_params=pltpu.CompilerParams(
            dimension_semantics=("parallel", "parallel")),
    )(feat, light, kp, coords, w1, b1, w2, b2, w3, b3, w4, b4)

    if hw_pad != hw:
        out = out[:, :, :hw]
    return out.reshape(b, out_dim, h, w)        # free reshape; already NCHW order


# ----------------------------------------------------------------------------
# Pure-JAX reference (mirrors the PyTorch module; square-map semantics).
# ----------------------------------------------------------------------------
def pifu_reference(feature_map, global_lightcode, keypoint, params):
    b, c1, h, w = feature_map.shape
    _, c2 = global_lightcode.shape
    _, c3, _ = keypoint.shape
    kp = keypoint.astype(jnp.float32) * jnp.float32(h)
    y_key = kp[:, :, 0][:, :, None, None]
    x_key = kp[:, :, 1][:, :, None, None]
    row_idx = jnp.arange(h, dtype=jnp.float32)[None, None, :, None]
    col_idx = jnp.arange(w, dtype=jnp.float32)[None, None, None, :]
    dist = jnp.sqrt((x_key - row_idx) ** 2 + (y_key - col_idx) ** 2)
    expanded = jnp.broadcast_to(
        global_lightcode[:, :, None, None].astype(jnp.float32), (b, c2, h, w))
    cat = jnp.concatenate([feature_map.astype(jnp.float32), expanded, dist], axis=1)
    x = jnp.transpose(cat, (0, 2, 3, 1)).reshape(-1, c1 + c2 + c3)
    w1, b1, w2, b2, w3, b3, w4, b4 = params
    x = _leaky_relu(x @ w1.T + b1[:, 0])
    x = _leaky_relu(x @ w2.T + b2[:, 0])
    x = _leaky_relu(x @ w3.T + b3[:, 0])
    x = jnp.tanh(x @ w4.T + b4[:, 0])
    return x.reshape(b, h, w, -1).transpose(0, 3, 1, 2)


def init_params(key, latent_dim):
    """Deterministic init. Weights stored torch-style (out, in); biases (out, 1)."""
    ks = jax.random.split(key, 8)
    dims = [(latent_dim, latent_dim),
            (latent_dim, latent_dim),
            (latent_dim, latent_dim // 2),
            (latent_dim // 2, 3)]
    params = []
    for i, (din, dout) in enumerate(dims):
        scale = 1.0 / jnp.sqrt(jnp.float32(din))
        wmat = jax.random.uniform(ks[2 * i], (dout, din), jnp.float32,
                                  minval=-scale, maxval=scale)
        bvec = jax.random.uniform(ks[2 * i + 1], (dout, 1), jnp.float32,
                                  minval=-scale, maxval=scale)
        params += [wmat, bvec]
    return tuple(params)


if __name__ == "__main__":
    # Small shapes consistent with the module: latent_dim = c1 + c2 + c3.
    b, c1, c2, c3 = 2, 16, 8, 8
    h = w = 16
    latent_dim = c1 + c2 + c3  # 32

    key = jax.random.PRNGKey(0)
    k_feat, k_light, k_kp, k_param = jax.random.split(key, 4)

    feature_map = jax.random.normal(k_feat, (b, c1, h, w), jnp.float32)
    global_lightcode = jax.random.normal(k_light, (b, c2), jnp.float32)
    keypoint = jax.random.uniform(k_kp, (b, c3, 2), jnp.float32)  # normalized coords

    params = init_params(k_param, latent_dim)

    fwd = jax.jit(pifu_forward)
    out = fwd(feature_map, global_lightcode, keypoint, params)
    jax.block_until_ready(out)

    ref = pifu_reference(feature_map, global_lightcode, keypoint, params)
    assert out.shape == (b, 3, h, w), out.shape
    max_err = float(jnp.max(jnp.abs(out - ref)))
    assert jnp.allclose(out, ref, atol=1e-3, rtol=1e-3), f"mismatch vs ref: {max_err}"

    print("KERNEL_OK")
</pallas_src>

<mosaic_0001>
module attributes {stable_mosaic.version = 11 : i64} {
  func.func @_pifu_kernel(%arg0: i32, %arg1: i32, %arg2: memref<1x16x256xf32, #tpu.memory_space<vmem>>, %arg3: memref<1x8x1xf32, #tpu.memory_space<vmem>>, %arg4: memref<1x8x2xf32, #tpu.memory_space<vmem>>, %arg5: memref<2x256xf32, #tpu.memory_space<vmem>>, %arg6: memref<32x32xf32, #tpu.memory_space<vmem>>, %arg7: memref<32x1xf32, #tpu.memory_space<vmem>>, %arg8: memref<32x32xf32, #tpu.memory_space<vmem>>, %arg9: memref<32x1xf32, #tpu.memory_space<vmem>>, %arg10: memref<16x32xf32, #tpu.memory_space<vmem>>, %arg11: memref<16x1xf32, #tpu.memory_space<vmem>>, %arg12: memref<3x16xf32, #tpu.memory_space<vmem>>, %arg13: memref<3x1xf32, #tpu.memory_space<vmem>>, %arg14: memref<1x3x256xf32, #tpu.memory_space<vmem>>) attributes {dimension_semantics = [#tpu.dimension_semantics<parallel>, #tpu.dimension_semantics<parallel>], iteration_bounds = array<i64: 2, 1>, scalar_prefetch = 0 : i64, scratch_operands = 0 : i64, tpu.core_type = #tpu.core_type<tc>, window_params = [{transform_indices = @transform_0, window_bounds = array<i64: 1, 16, 256>}, {transform_indices = @transform_1, window_bounds = array<i64: 1, 8, 1>}, {transform_indices = @transform_2, window_bounds = array<i64: 1, 8, 2>}, {transform_indices = @transform_3, window_bounds = array<i64: 2, 256>}, {pipeline_mode = #tpu.pipeline_mode<synchronous>, transform_indices = @transform_4, window_bounds = array<i64: 32, 32>}, {pipeline_mode = #tpu.pipeline_mode<synchronous>, transform_indices = @transform_5, window_bounds = array<i64: 32, 1>}, {pipeline_mode = #tpu.pipeline_mode<synchronous>, transform_indices = @transform_6, window_bounds = array<i64: 32, 32>}, {pipeline_mode = #tpu.pipeline_mode<synchronous>, transform_indices = @transform_7, window_bounds = array<i64: 32, 1>}, {pipeline_mode = #tpu.pipeline_mode<synchronous>, transform_indices = @transform_8, window_bounds = array<i64: 16, 32>}, {pipeline_mode = #tpu.pipeline_mode<synchronous>, transform_indices = @transform_9, window_bounds = array<i64: 16, 1>}, {pipeline_mode = #tpu.pipeline_mode<synchronous>, transform_indices = @transform_10, window_bounds = array<i64: 3, 16>}, {pipeline_mode = #tpu.pipeline_mode<synchronous>, transform_indices = @transform_11, window_bounds = array<i64: 3, 1>}, {transform_indices = @transform_12, window_bounds = array<i64: 1, 3, 256>}]} {
    %c0 = arith.constant 0 : index
    %c0_0 = arith.constant 0 : index
    %c0_1 = arith.constant 0 : index
    %0 = vector.load %arg2[%c0, %c0_0, %c0_1] : memref<1x16x256xf32, #tpu.memory_space<vmem>>, vector<1x16x256xf32>
    %1 = vector.shape_cast %0 : vector<1x16x256xf32> to vector<16x256xf32>
    %c0_2 = arith.constant 0 : index
    %c0_3 = arith.constant 0 : index
    %c0_4 = arith.constant 0 : index
    %2 = vector.load %arg3[%c0_2, %c0_3, %c0_4] : memref<1x8x1xf32, #tpu.memory_space<vmem>>, vector<1x8x1xf32>
    %3 = vector.shape_cast %2 : vector<1x8x1xf32> to vector<8x1xf32>
    %4 = vector.shape_cast %3 : vector<8x1xf32> to vector<8x1xf32>
    %5 = vector.broadcast %4 : vector<8x1xf32> to vector<8x256xf32>
    %c0_5 = arith.constant 0 : index
    %c0_6 = arith.constant 0 : index
    %c0_7 = arith.constant 0 : index
    %6 = vector.load %arg4[%c0_5, %c0_6, %c0_7] : memref<1x8x2xf32, #tpu.memory_space<vmem>>, vector<1x8x2xf32>
    %7 = vector.shape_cast %6 : vector<1x8x2xf32> to vector<8x2xf32>
    %cst = arith.constant 1.600000e+01 : f32
    %8 = vector.broadcast %cst : f32 to vector<8x2xf32>
    %9 = arith.mulf %7, %8 : vector<8x2xf32>
    %10 = vector.extract_strided_slice %9 {offsets = [0, 1], sizes = [8, 1], strides = [1, 1]} : vector<8x2xf32> to vector<8x1xf32>
    %11 = vector.extract_strided_slice %9 {offsets = [0, 0], sizes = [8, 1], strides = [1, 1]} : vector<8x2xf32> to vector<8x1xf32>
    %c0_8 = arith.constant 0 : index
    %c0_9 = arith.constant 0 : index
    %12 = vector.load %arg5[%c0_8, %c0_9] : memref<2x256xf32, #tpu.memory_space<vmem>>, vector<2x256xf32>
    %13 = vector.extract_strided_slice %12 {offsets = [0, 0], sizes = [1, 256], strides = [1, 1]} : vector<2x256xf32> to vector<1x256xf32>
    %14 = vector.extract_strided_slice %12 {offsets = [1, 0], sizes = [1, 256], strides = [1, 1]} : vector<2x256xf32> to vector<1x256xf32>
    %15 = vector.broadcast %10 : vector<8x1xf32> to vector<8x256xf32>
    %16 = vector.broadcast %13 : vector<1x256xf32> to vector<8x256xf32>
    %17 = arith.subf %15, %16 : vector<8x256xf32>
    %18 = arith.mulf %17, %17 : vector<8x256xf32>
    %19 = vector.broadcast %11 : vector<8x1xf32> to vector<8x256xf32>
    %20 = vector.broadcast %14 : vector<1x256xf32> to vector<8x256xf32>
    %21 = arith.subf %19, %20 : vector<8x256xf32>
    %22 = arith.mulf %21, %21 : vector<8x256xf32>
    %23 = arith.addf %18, %22 : vector<8x256xf32>
    %24 = math.sqrt %23 : vector<8x256xf32>
    %25 = tpu.concatenate %1, %5, %24 in 0 : vector<16x256xf32>, vector<8x256xf32>, vector<8x256xf32> -> vector<32x256xf32>
    %c0_10 = arith.constant 0 : index
    %c0_11 = arith.constant 0 : index
    %26 = vector.load %arg6[%c0_10, %c0_11] : memref<32x32xf32, #tpu.memory_space<vmem>>, vector<32x32xf32>
    %cst_12 = arith.constant dense<0.000000e+00> : vector<32x256xf32>
    %27 = tpu.matmul %26, %25, %cst_12 {dimension_numbers = #tpu.dot_dimension_numbers<[1], [0], [0], [1], [0, 0, 1, 1], [], []>} : vector<32x32xf32>, vector<32x256xf32>, vector<32x256xf32> -> vector<32x256xf32>
    %c0_13 = arith.constant 0 : index
    %c0_14 = arith.constant 0 : index
    %28 = vector.load %arg7[%c0_13, %c0_14] : memref<32x1xf32, #tpu.memory_space<vmem>>, vector<32x1xf32>
    %29 = vector.broadcast %28 : vector<32x1xf32> to vector<32x256xf32>
    %30 = arith.addf %27, %29 : vector<32x256xf32>
    %cst_15 = arith.constant 0.000000e+00 : f32
    %31 = vector.broadcast %cst_15 : f32 to vector<32x256xf32>
    %32 = arith.cmpf oge, %30, %31 : vector<32x256xf32>
    %cst_16 = arith.constant 2.000000e-01 : f32
    %33 = vector.broadcast %cst_16 : f32 to vector<32x256xf32>
    %34 = arith.mulf %33, %30 : vector<32x256xf32>
    %35 = arith.select %32, %30, %34 : vector<32x256xi1>, vector<32x256xf32>
    %c0_17 = arith.constant 0 : index
    %c0_18 = arith.constant 0 : index
    %36 = vector.load %arg8[%c0_17, %c0_18] : memref<32x32xf32, #tpu.memory_space<vmem>>, vector<32x32xf32>
    %cst_19 = arith.constant dense<0.000000e+00> : vector<32x256xf32>
    %37 = tpu.matmul %36, %35, %cst_19 {dimension_numbers = #tpu.dot_dimension_numbers<[1], [0], [0], [1], [0, 0, 1, 1], [], []>} : vector<32x32xf32>, vector<32x256xf32>, vector<32x256xf32> -> vector<32x256xf32>
    %c0_20 = arith.constant 0 : index
    %c0_21 = arith.constant 0 : index
    %38 = vector.load %arg9[%c0_20, %c0_21] : memref<32x1xf32, #tpu.memory_space<vmem>>, vector<32x1xf32>
    %39 = vector.broadcast %38 : vector<32x1xf32> to vector<32x256xf32>
    %40 = arith.addf %37, %39 : vector<32x256xf32>
    %cst_22 = arith.constant 0.000000e+00 : f32
    %41 = vector.broadcast %cst_22 : f32 to vector<32x256xf32>
    %42 = arith.cmpf oge, %40, %41 : vector<32x256xf32>
    %cst_23 = arith.constant 2.000000e-01 : f32
    %43 = vector.broadcast %cst_23 : f32 to vector<32x256xf32>
    %44 = arith.mulf %43, %40 : vector<32x256xf32>
    %45 = arith.select %42, %40, %44 : vector<32x256xi1>, vector<32x256xf32>
    %c0_24 = arith.constant 0 : index
    %c0_25 = arith.constant 0 : index
    %46 = vector.load %arg10[%c0_24, %c0_25] : memref<16x32xf32, #tpu.memory_space<vmem>>, vector<16x32xf32>
    %cst_26 = arith.constant dense<0.000000e+00> : vector<16x256xf32>
    %47 = tpu.matmul %46, %45, %cst_26 {dimension_numbers = #tpu.dot_dimension_numbers<[1], [0], [0], [1], [0, 0, 1, 1], [], []>} : vector<16x32xf32>, vector<32x256xf32>, vector<16x256xf32> -> vector<16x256xf32>
    %c0_27 = arith.constant 0 : index
    %c0_28 = arith.constant 0 : index
    %48 = vector.load %arg11[%c0_27, %c0_28] : memref<16x1xf32, #tpu.memory_space<vmem>>, vector<16x1xf32>
    %49 = vector.broadcast %48 : vector<16x1xf32> to vector<16x256xf32>
    %50 = arith.addf %47, %49 : vector<16x256xf32>
    %cst_29 = arith.constant 0.000000e+00 : f32
    %51 = vector.broadcast %cst_29 : f32 to vector<16x256xf32>
    %52 = arith.cmpf oge, %50, %51 : vector<16x256xf32>
    %cst_30 = arith.constant 2.000000e-01 : f32
    %53 = vector.broadcast %cst_30 : f32 to vector<16x256xf32>
    %54 = arith.mulf %53, %50 : vector<16x256xf32>
    %55 = arith.select %52, %50, %54 : vector<16x256xi1>, vector<16x256xf32>
    %c0_31 = arith.constant 0 : index
    %c0_32 = arith.constant 0 : index
    %56 = vector.load %arg12[%c0_31, %c0_32] : memref<3x16xf32, #tpu.memory_space<vmem>>, vector<3x16xf32>
    %cst_33 = arith.constant dense<0.000000e+00> : vector<3x256xf32>
    %57 = tpu.matmul %56, %55, %cst_33 {dimension_numbers = #tpu.dot_dimension_numbers<[1], [0], [0], [1], [0, 0, 1, 1], [], []>} : vector<3x16xf32>, vector<16x256xf32>, vector<3x256xf32> -> vector<3x256xf32>
    %c0_34 = arith.constant 0 : index
    %c0_35 = arith.constant 0 : index
    %58 = vector.load %arg13[%c0_34, %c0_35] : memref<3x1xf32, #tpu.memory_space<vmem>>, vector<3x1xf32>
    %59 = vector.broadcast %58 : vector<3x1xf32> to vector<3x256xf32>
    %60 = arith.addf %57, %59 : vector<3x256xf32>
    %61 = math.tanh %60 : vector<3x256xf32>
    %c0_36 = arith.constant 0 : index
    %c0_37 = arith.constant 0 : index
    %c0_38 = arith.constant 0 : index
    %62 = vector.load %arg14[%c0_36, %c0_37, %c0_38] : memref<1x3x256xf32, #tpu.memory_space<vmem>>, vector<1x3x256xf32>
    %63 = vector.shape_cast %62 : vector<1x3x256xf32> to vector<3x256xf32>
    %64 = vector.shape_cast %61 : vector<3x256xf32> to vector<1x3x256xf32>
    tpu.vector_store %arg14[%c0_36, %c0_37, %c0_38], %64 {strides = array<i32>} : memref<1x3x256xf32, #tpu.memory_space<vmem>>, vector<1x3x256xf32>,
    return
  }
  func.func @transform_0(%arg0: i32, %arg1: i32) -> (i32, i32, i32) {
    %c0_i32 = arith.constant 0 : i32
    %c0_i32_0 = arith.constant 0 : i32
    return %arg0, %c0_i32, %arg1 : i32, i32, i32
  }
  func.func @transform_1(%arg0: i32, %arg1: i32) -> (i32, i32, i32) {
    %c0_i32 = arith.constant 0 : i32
    %c0_i32_0 = arith.constant 0 : i32
    %c0_i32_1 = arith.constant 0 : i32
    return %arg0, %c0_i32, %c0_i32_0 : i32, i32, i32
  }
  func.func @transform_2(%arg0: i32, %arg1: i32) -> (i32, i32, i32) {
    %c0_i32 = arith.constant 0 : i32
    %c0_i32_0 = arith.constant 0 : i32
    %c0_i32_1 = arith.constant 0 : i32
    return %arg0, %c0_i32, %c0_i32_0 : i32, i32, i32
  }
  func.func @transform_3(%arg0: i32, %arg1: i32) -> (i32, i32) {
    %c0_i32 = arith.constant 0 : i32
    %c0_i32_0 = arith.constant 0 : i32
    return %c0_i32, %arg1 : i32, i32
  }
  func.func @transform_4(%arg0: i32, %arg1: i32) -> (i32, i32) {
    %c0_i32 = arith.constant 0 : i32
    %c0_i32_0 = arith.constant 0 : i32
    %c0_i32_1 = arith.constant 0 : i32
    return %c0_i32, %c0_i32_0 : i32, i32
  }
  func.func @transform_5(%arg0: i32, %arg1: i32) -> (i32, i32) {
    %c0_i32 = arith.constant 0 : i32
    %c0_i32_0 = arith.constant 0 : i32
    %c0_i32_1 = arith.constant 0 : i32
    return %c0_i32, %c0_i32_0 : i32, i32
  }
  func.func @transform_6(%arg0: i32, %arg1: i32) -> (i32, i32) {
    %c0_i32 = arith.constant 0 : i32
    %c0_i32_0 = arith.constant 0 : i32
    %c0_i32_1 = arith.constant 0 : i32
    return %c0_i32, %c0_i32_0 : i32, i32
  }
  func.func @transform_7(%arg0: i32, %arg1: i32) -> (i32, i32) {
    %c0_i32 = arith.constant 0 : i32
    %c0_i32_0 = arith.constant 0 : i32
    %c0_i32_1 = arith.constant 0 : i32
    return %c0_i32, %c0_i32_0 : i32, i32
  }
  func.func @transform_8(%arg0: i32, %arg1: i32) -> (i32, i32) {
    %c0_i32 = arith.constant 0 : i32
    %c0_i32_0 = arith.constant 0 : i32
    %c0_i32_1 = arith.constant 0 : i32
    return %c0_i32, %c0_i32_0 : i32, i32
  }
  func.func @transform_9(%arg0: i32, %arg1: i32) -> (i32, i32) {
    %c0_i32 = arith.constant 0 : i32
    %c0_i32_0 = arith.constant 0 : i32
    %c0_i32_1 = arith.constant 0 : i32
    return %c0_i32, %c0_i32_0 : i32, i32
  }
  func.func @transform_10(%arg0: i32, %arg1: i32) -> (i32, i32) {
    %c0_i32 = arith.constant 0 : i32
    %c0_i32_0 = arith.constant 0 : i32
    %c0_i32_1 = arith.constant 0 : i32
    return %c0_i32, %c0_i32_0 : i32, i32
  }
  func.func @transform_11(%arg0: i32, %arg1: i32) -> (i32, i32) {
    %c0_i32 = arith.constant 0 : i32
    %c0_i32_0 = arith.constant 0 : i32
    %c0_i32_1 = arith.constant 0 : i32
    return %c0_i32, %c0_i32_0 : i32, i32
  }
  func.func @transform_12(%arg0: i32, %arg1: i32) -> (i32, i32, i32) {
    %c0_i32 = arith.constant 0 : i32
    %c0_i32_0 = arith.constant 0 : i32
    return %arg0, %c0_i32, %arg1 : i32, i32, i32
  }
}

</mosaic_0001>

<bundles_post_ra>
// kernel: pifu_forward.1
= control target key start
LH: loop header
LB: loop body
LE: loop exit
PB: predicated region body
PF: predicated region fallthrough
CT: control target
= control target key end

     0   :  { %s1254_s21 = smov 0   ;;  %s1256_s22 = smov 0   ;;  %s1391_s0 = inlined_call_operand.vmem [shape: f32[2,16,256], index: 0, kind: input, shape index: {}]   ;;  %s1392_s1 = inlined_call_operand.vmem [shape: f32[2,8,1], index: 1, kind: input, shape index: {}]   ;;  %s1393_s2 = inlined_call_operand.vmem [shape: f32[2,8,2], index: 2, kind: input, shape index: {}]   ;;  %s1394_s3 = inlined_call_operand.vmem [shape: f32[2,256], index: 3, kind: input, shape index: {}]   ;;  %s1395_s4 = inlined_call_operand.vmem [shape: f32[32,32], index: 4, kind: input, shape index: {}]   ;;  %s1396_s5 = inlined_call_operand.vmem [shape: f32[32,1], index: 5, kind: input, shape index: {}]   ;;  %s1397_s6 = inlined_call_operand.vmem [shape: f32[32,32], index: 6, kind: input, shape index: {}]   ;;  %s1398_s7 = inlined_call_operand.vmem [shape: f32[32,1], index: 7, kind: input, shape index: {}]   ;;  %s1399_s8 = inlined_call_operand.vmem [shape: f32[16,32], index: 8, kind: input, shape index: {}]   ;;  %s1400_s9 = inlined_call_operand.vmem [shape: f32[16,1], index: 9, kind: input, shape index: {}]   ;;  %s1401_s10 = inlined_call_operand.vmem [shape: f32[3,16], index: 10, kind: input, shape index: {}]   ;;  %s1402_s11 = inlined_call_operand.vmem [shape: f32[3,1], index: 11, kind: input, shape index: {}]   ;;  %s1403_s12 = inlined_call_operand.vmem [shape: f32[2,3,256], index: 12, kind: output, shape index: {}]  }
   0x1   :  { %s1258_s23 = smov 0  }
   0x2 LB: > { %s34_s24 = sadd.s32 1, %s1181_s22  ;;  %p1092_p0 = scmp.ge.s32.totalorder %s1185_s23, 1  ;;  %s1185_s23 = sphi %s1258_s23, %s22_s23   ;;  %s1181_s22 = sphi %s1256_s22, %s1405_s22   ;;  %s1177_s21 = sphi %s1254_s21, %s1404_s21  }
   0x3   : > { %p36_p1 = scmp.ge.s32.totalorder %s34_s24, 2  ;;  %p412_p2 = scmp.lt.s32.totalorder %s1185_s23, 3 }
   0x5   : > { %s1407_s24 = smov (%p36_p1, %s34_s24), 0  ;;  %p413_p3 = pnand %p1092_p0, %p412_p2 }
   0x6   : > { %p476_p4 = scmp.lt.s32.totalorder (!%p413_p3), %s1177_s21, 1 }
   0x7   : > { %416 = sbr.rel (%p413_p3) target bundleno = 794 (0x31a), region = 68 }
   0xc   : > { %v1187_v0 = vmov 1   ;;  %v1188_v1 = vmov 0   ;;  %s1409_s21 = smov (!%p476_p4, %s1177_s21), 1  ;;  %v585_v5 = vld [vmem:[%s1396_s5 + $0x18] sm:$0xff]  ;;  %v582_v6 = vld [vmem:[%s1396_s5] sm:$0xff]  ;;  %v707_v7 = vld [vmem:[%s1398_s7 + $0x10] sm:$0xff] }
   0xd   : > { %1151 = vset.pattern.permute.xlu0 %v1187_v0  ;;  %1153 = vset.pattern.permute.xlu1 %v1188_v1  ;;  %s1275_s25 = sshll.u32 %s1409_s21, 3  ;;  %v706_v8 = vld [vmem:[%s1398_s7 + $0x8] sm:$0xff]  ;;  %v825_v10 = vld [vmem:[%s1400_s9] sm:$0xff]  ;;  %v584_v41 = vld [vmem:[%s1396_s5 + $0x10] sm:$0xff]  ;;  %s1123_s17 = sshll.u32 %s1409_s21, 5  ;;  %vm606_vm4 = vcmask 261120  }
   0xe   : > { %1154 = vset.pattern.permute.xlu2 %v1188_v1  ;;  %s492_s28 = scalar_lea.vmem %s1393_s2, %s1275_s25  ;;  %s488_s13 = scalar_lea.vmem %s1392_s1, %s1275_s25  ;;  %v826_v9 = vld [vmem:[%s1400_s9 + $0x8] sm:$0xff]  ;;  %v521_v11 = vld [vmem:[%s1394_s3] sm:$0xf]  ;;  %v708_v60 = vld [vmem:[%s1398_s7 + $0x18] sm:$0xff] }
   0xf   : > { %v519_v2 = vld [vmem:[%s492_s28] sm:$0xff]  ;;  %v528_v12 = vperm.slane %v521_v11, 0  ;;  %v529_v13 = vperm.slane %v521_v11, 2  ;;  %v542_v15 = vperm.slane %v521_v11, 1  ;;  %v543_v16 = vperm.slane %v521_v11, 3  ;;  %598 = vperm.xlu2 %1154, %v584_v41   ;;  %s483_s20 = scalar_lea.vmem %s1391_s0, %s1123_s17  ;;  %v583_v53 = vld [vmem:[%s1396_s5 + $0x8] sm:$0xff]  ;;  %s507_s29 = scalar_lea.vmem %s1403_s12, %s1275_s25 }
  0x10   : > { %v520_v3 = vmul.f32 16.0, %v519_v2  ;;  %v513_v4 = vld [vmem:[%s488_s13] sm:$0xff]  ;;  %v511_v55 = vld [vmem:[%s483_s20 + $0x10] sm:$0xff]  ;;  %v512_v56 = vld [vmem:[%s483_s20 + $0x18] sm:$0xff] }
  0x11   : > { %516 = vperm.xlu1 %1153, %v513_v4   ;;  %v532_v17 = vperm.slane %v528_v12, 0  ;;  %v533_v18 = vperm.slane %v529_v13, 0  ;;  %v546_v19 = vperm.slane %v542_v15, 1  ;;  %v547_v20 = vperm.slane %v543_v16, 1  ;;  %v509_v57 = vld [vmem:[%s483_s20] sm:$0xff]  ;;  %v510_v58 = vld [vmem:[%s483_s20 + $0x8] sm:$0xff] }
  0x12   : > { %524 = vperm.xlu0 %1151, %v520_v3   ;;  %v578_v59 = vld [vmem:[%s1395_s4] sm:$0xff]  ;;  %v579_v61 = vld [vmem:[%s1395_s4 + $0x8] sm:$0xff]  ;;  %v580_v63 = vld [vmem:[%s1395_s4 + $0x10] sm:$0xff] }
  0x13   : > { %v705_v62 = vld [vmem:[%s1398_s7] sm:$0xff]  ;;  %v704_v41 = vld [vmem:[%s1397_s6 + $0x18] sm:$0xff] }
  0x14   : > { %v902_v0 = vld [vmem:[%s1402_s11] sm:$0x7] }
  0x17   : > { %593 = vperm.xlu2 %1154, %v583_v53  }
  0x19   : > { %603 = vperm.xlu1 %1153, %v585_v5  }
  0x1a   : > { %1152 = vset.pattern.permute.xlu0 %v1188_v1  ;;  %v581_v1 = vld [vmem:[%s1395_s4 + $0x18] sm:$0xff] }
  0x1b   : > { %539 = vperm.xlu0 %1152, %v520_v3  }
  0x1f   : > { %726 = vperm.xlu2 %1154, %v708_v60  }
  0x21   : > { %588 = vperm.xlu1 %1153, %v582_v6  }
  0x23   : > { %721 = vperm.xlu0 %1152, %v707_v7  }
  0x27   : > { %711 = vperm.xlu2 %1154, %v705_v62  }
  0x29   : > { %716 = vperm.xlu1 %1153, %v706_v8  }
  0x2b   : > { %834 = vperm.xlu0 %1152, %v826_v9  }
  0x2f   : > { %905 = vperm.xlu2 %1154, %v902_v0  }
  0x31   : > { %829 = vperm.xlu1 %1153, %v825_v10  }
  0x69   : > { %v599_v6 = vpop.permute.xlu2 %598 }
  0x71   : > { %v594_v11 = vpop.permute.xlu2 %593 }
  0x83   : > { %v517_v54 = vpop.permute.xlu1 %516 }
  0x84   : > { %v525_v14 = vpop.permute.xlu0 %524 }
  0x85   : > { %v534_v21 = vsub.f32 %v525_v14, %v532_v17  ;;  %v535_v22 = vsub.f32 %v525_v14, %v533_v18 }
  0x87   : > { %v536_v26 = vmul.f32 %v534_v21, %v534_v21  ;;  %v537_v27 = vmul.f32 %v535_v22, %v535_v22 }
  0x8b   : > { %v604_v7 = vpop.permute.xlu1 %603 }
  0x8d   : > { %v540_v23 = vpop.permute.xlu0 %539 }
  0x8e   : > { %v548_v24 = vsub.f32 %v540_v23, %v546_v19  ;;  %v549_v25 = vsub.f32 %v540_v23, %v547_v20 }
  0x90   : > { %v550_v28 = vmul.f32 %v548_v24, %v548_v24  ;;  %v551_v29 = vmul.f32 %v549_v25, %v549_v25 }
  0x92   : > { %v552_v30 = vadd.f32 %v550_v28, %v536_v26  ;;  %v553_v31 = vadd.f32 %v551_v29, %v537_v27 }
  0x93   : > { %v589_v14 = vpop.permute.xlu1 %588 }
  0x94   : > { %1155 = vrsqrt.f32 %v552_v30  ;;  %vm561_vm0 = vcmp.eq.f32.partialorder %v552_v30, inf  ;;  %v564_v46 = vand.u32 2147483648, %v552_v30  ;;  %vm563_vm1 = vcmp.eq.f32.partialorder %v552_v30, 0.0 }
  0x95   : > { %1157 = vrsqrt.f32 %v553_v31  ;;  %vm573_vm2 = vcmp.eq.f32.partialorder %v553_v31, inf  ;;  %v576_v49 = vand.u32 2147483648, %v553_v31  ;;  %vm575_vm3 = vcmp.eq.f32.partialorder %v553_v31, 0.0 }
  0x9a   : > { %v1156_v32 = vpop.eup %1155 }
  0x9b   : > { %v1158_v33 = vpop.eup %1157  ;;  %v555_v34 = vmul.f32 %v1156_v32, %v552_v30 }
  0x9c   : > { %v567_v35 = vmul.f32 %v1158_v33, %v553_v31 }
  0x9d   : > { %v556_v36 = vmul.f32 %v1156_v32, %v555_v34 }
  0x9e   : > { %v568_v37 = vmul.f32 %v1158_v33, %v567_v35 }
  0x9f   : > { %v557_v38 = vmul.f32 0.5, %v556_v36  ;;  %v701_v36 = vld [vmem:[%s1397_s6] sm:$0xff] }
  0xa0   : > { %v569_v39 = vmul.f32 0.5, %v568_v37 }
  0xa1   : > { %v558_v40 = vsub.f32 1.5, %v557_v38 }
  0xa2   : > { %v570_v42 = vsub.f32 1.5, %v569_v39  ;;  %v702_v39 = vld [vmem:[%s1397_s6 + $0x8] sm:$0xff] }
  0xa3   : > { %v559_v43 = vmul.f32 %v1156_v32, %v558_v40  ;;  %v703_v40 = vld [vmem:[%s1397_s6 + $0x10] sm:$0xff] }
  0xa4   : > { %v571_v44 = vmul.f32 %v1158_v33, %v570_v42 }
  0xa5   : > { %v560_v45 = vmul.f32 %v559_v43, %v552_v30 }
  0xa6   : > { %v572_v47 = vmul.f32 %v571_v44, %v553_v31 }
  0xa7   : > { %v562_v48 = vsel %vm561_vm0, %v552_v30, %v560_v45 }
  0xa8   : > { %v565_v50 = vsel %vm563_vm1, %v564_v46, %v562_v48  ;;  %v574_v51 = vsel %vm573_vm2, %v553_v31, %v572_v47  ;;  %v727_v46 = vpop.permute.xlu2 %726 }
  0xa9   : > { %631 = vmatpush.msra.mxu0 %v565_v50  ;;  %v577_v52 = vsel %vm575_vm3, %v576_v49, %v574_v51  ;;  %v722_v49 = vpop.permute.xlu0 %721  ;;  %v717_v51 = vpop.permute.xlu1 %716 }
  0xaa   : > { %660 = vmatpush.msra.mxu1 %v577_v52 }
  0xab   : > { %632 = vmatpush.msra.mxu0 %v517_v54 }
  0xac   : > { %661 = vmatpush.msra.mxu1 %v517_v54 }
  0xad   : > { %633 = vmatpush.msra.mxu0 %v511_v55 }
  0xae   : > { %662 = vmatpush.msra.mxu1 %v512_v56 }
  0xaf   : > { %634 = vmatpush.msra.mxu0 %v509_v57 }
  0xb0   : > { %663 = vmatpush.msra.mxu1 %v510_v58  ;;  %1099 = vmatmul.msk.f32.vlgmr.msra.gmra.mxu0 %vm606_vm4, %v578_v59  ;;  %v712_v54 = vpop.permute.xlu2 %711 }
  0xb1   : > { %1103 = vmatmul.msk.f32.vlgmr.msra.gmra.mxu1 %vm606_vm4, %v578_v59 }
  0xb8   : > { %1100 = vmatmul.msk.f32.gmra.mxu0 %vm606_vm4, %v579_v61 }
  0xb9   : > { %1104 = vmatmul.msk.f32.gmra.mxu1 %vm606_vm4, %v579_v61 }
  0xc0   : > { %1101 = vmatmul.msk.f32.gmra.mxu0 %vm606_vm4, %v580_v63 }
  0xc1   : > { %1105 = vmatmul.msk.f32.gmra.mxu1 %vm606_vm4, %v580_v63 }
  0xc8   : > { %1102 = vmatmul.msk.f32.gmra.mxu0 %vm606_vm4, %v581_v1 }
  0xc9   : > { %1106 = vmatmul.msk.f32.gmra.mxu1 %vm606_vm4, %v581_v1 }
 0x12d   : > { %v636_v2 = vpop.f32.mrf.mxu0 }
 0x12e   : > { %v665_v3 = vpop.f32.mrf.mxu1  ;;  %v637_v18 = vadd.f32 %v636_v2, %v589_v14 }
 0x12f   : > { %v666_v21 = vadd.f32 %v665_v3, %v589_v14 }
 0x130   : > { %v685_v31 = vmul.f32 0.2, %v637_v18  ;;  %vm677_vm11 = vcmp.ge.f32.partialorder %v637_v18, 0.0 }
 0x131   : > { %v686_v33 = vmul.f32 0.2, %v666_v21  ;;  %vm678_vm12 = vcmp.ge.f32.partialorder %v666_v21, 0.0 }
 0x132   : > { %v693_v37 = vsel %vm677_vm11, %v637_v18, %v685_v31  ;;  %v830_v18 = vpop.permute.xlu1 %829 }
 0x133   : > { %v694_v38 = vsel %vm678_vm12, %v666_v21, %v686_v33 }
 0x135   : > { %v639_v4 = vpop.f32.mrf.mxu0 }
 0x136   : > { %v668_v5 = vpop.f32.mrf.mxu1  ;;  %v640_v15 = vadd.f32 %v639_v4, %v594_v11 }
 0x137   : > { %v669_v19 = vadd.f32 %v668_v5, %v594_v11 }
 0x138   : > { %v687_v27 = vmul.f32 0.2, %v640_v15  ;;  %vm679_vm9 = vcmp.ge.f32.partialorder %v640_v15, 0.0 }
 0x139   : > { %v688_v29 = vmul.f32 0.2, %v669_v19  ;;  %vm680_vm10 = vcmp.ge.f32.partialorder %v669_v19, 0.0 }
 0x13a   : > { %v695_v34 = vsel %vm679_vm9, %v640_v15, %v687_v27  ;;  %v824_v15 = vld [vmem:[%s1399_s8 + $0x8] sm:$0xff] }
 0x13b   : > { %v696_v35 = vsel %vm680_vm10, %v669_v19, %v688_v29  ;;  %vm957_vm10 = vcmask 1043456  }
 0x13d   : > { %v642_v8 = vpop.f32.mrf.mxu0 }
 0x13e   : > { %v671_v9 = vpop.f32.mrf.mxu1  ;;  %v643_v10 = vadd.f32 %v642_v8, %v599_v6 }
 0x13f   : > { %v672_v12 = vadd.f32 %v671_v9, %v599_v6 }
 0x140   : > { %v689_v23 = vmul.f32 0.2, %v643_v10  ;;  %vm681_vm7 = vcmp.ge.f32.partialorder %v643_v10, 0.0 }
 0x141   : > { %v690_v25 = vmul.f32 0.2, %v672_v12  ;;  %vm682_vm8 = vcmp.ge.f32.partialorder %v672_v12, 0.0 }
 0x142   : > { %v697_v30 = vsel %vm681_vm7, %v643_v10, %v689_v23 }
 0x143   : > { %v698_v32 = vsel %vm682_vm8, %v672_v12, %v690_v25  ;;  %v823_v12 = vld [vmem:[%s1399_s8] sm:$0xff] }
 0x145   : > { %v645_v13 = vpop.f32.mrf.mxu0 }
 0x146   : > { %v646_v16 = vadd.f32 %v645_v13, %v604_v7  ;;  %v674_v17 = vpop.f32.mrf.mxu1 }
 0x147   : > { %v675_v20 = vadd.f32 %v674_v17, %v604_v7 }
 0x148   : > { %vm683_vm5 = vcmp.ge.f32.partialorder %v646_v16, 0.0  ;;  %v691_v22 = vmul.f32 0.2, %v646_v16 }
 0x149   : > { %vm684_vm6 = vcmp.ge.f32.partialorder %v675_v20, 0.0  ;;  %v692_v24 = vmul.f32 0.2, %v675_v20 }
 0x14a   : > { %v699_v26 = vsel %vm683_vm5, %v646_v16, %v691_v22 }
 0x14b   : > { %753 = vmatpush.msra.mxu2 %v699_v26  ;;  %v700_v28 = vsel %vm684_vm6, %v675_v20, %v692_v24  ;;  %v835_v20 = vpop.permute.xlu0 %834 }
 0x14c   : > { %782 = vmatpush.msra.mxu3 %v700_v28 }
 0x14d   : > { %754 = vmatpush.msra.mxu2 %v697_v30 }
 0x14e   : > { %783 = vmatpush.msra.mxu3 %v698_v32  ;;  %v901_v32 = vld [vmem:[%s1401_s10] sm:$0x7] }
 0x14f   : > { %755 = vmatpush.msra.mxu2 %v695_v34 }
 0x150   : > { %784 = vmatpush.msra.mxu3 %v696_v35 }
 0x151   : > { %756 = vmatpush.msra.mxu2 %v693_v37 }
 0x152   : > { %785 = vmatpush.msra.mxu3 %v694_v38  ;;  %1107 = vmatmul.msk.f32.vlgmr.msra.gmra.mxu2 %vm606_vm4, %v701_v36 }
 0x153   : > { %1111 = vmatmul.msk.f32.vlgmr.msra.gmra.mxu3 %vm606_vm4, %v701_v36  ;;  %v906_v36 = vpop.permute.xlu2 %905 }
 0x15a   : > { %1108 = vmatmul.msk.f32.gmra.mxu2 %vm606_vm4, %v702_v39 }
 0x15b   : > { %1112 = vmatmul.msk.f32.gmra.mxu3 %vm606_vm4, %v702_v39 }
 0x162   : > { %1109 = vmatmul.msk.f32.gmra.mxu2 %vm606_vm4, %v703_v40 }
 0x163   : > { %1113 = vmatmul.msk.f32.gmra.mxu3 %vm606_vm4, %v703_v40 }
 0x16a   : > { %1110 = vmatmul.msk.f32.gmra.mxu2 %vm606_vm4, %v704_v41 }
 0x16b   : > { %1114 = vmatmul.msk.f32.gmra.mxu3 %vm606_vm4, %v704_v41 }
 0x1d5   : > { %v758_v42 = vpop.f32.mrf.mxu2 }
 0x1d6   : > { %v787_v43 = vpop.f32.mrf.mxu3  ;;  %v759_v58 = vadd.f32 %v758_v42, %v712_v54 }
 0x1d7   : > { %v788_v61 = vadd.f32 %v787_v43, %v712_v54 }
 0x1d8   : > { %v807_v7 = vmul.f32 0.2, %v759_v58  ;;  %vm799_vm3 = vcmp.ge.f32.partialorder %v759_v58, 0.0 }
 0x1d9   : > { %v808_v9 = vmul.f32 0.2, %v788_v61  ;;  %vm800_vm5 = vcmp.ge.f32.partialorder %v788_v61, 0.0 }
 0x1da   : > { %v815_v13 = vsel %vm799_vm3, %v759_v58, %v807_v7 }
 0x1db   : > { %v816_v14 = vsel %vm800_vm5, %v788_v61, %v808_v9 }
 0x1dd   : > { %v761_v44 = vpop.f32.mrf.mxu2 }
 0x1de   : > { %v790_v45 = vpop.f32.mrf.mxu3  ;;  %v762_v55 = vadd.f32 %v761_v44, %v717_v51 }
 0x1df   : > { %v791_v59 = vadd.f32 %v790_v45, %v717_v51 }
 0x1e0   : > { %v809_v3 = vmul.f32 0.2, %v762_v55  ;;  %vm801_vm1 = vcmp.ge.f32.partialorder %v762_v55, 0.0 }
 0x1e1   : > { %v810_v5 = vmul.f32 0.2, %v791_v59  ;;  %vm802_vm2 = vcmp.ge.f32.partialorder %v791_v59, 0.0 }
 0x1e2   : > { %v817_v10 = vsel %vm801_vm1, %v762_v55, %v809_v3 }
 0x1e3   : > { %v818_v11 = vsel %vm802_vm2, %v791_v59, %v810_v5 }
 0x1e5   : > { %v764_v47 = vpop.f32.mrf.mxu2 }
 0x1e6   : > { %v793_v48 = vpop.f32.mrf.mxu3  ;;  %v765_v50 = vadd.f32 %v764_v47, %v722_v49 }
 0x1e7   : > { %v794_v52 = vadd.f32 %v793_v48, %v722_v49 }
 0x1e8   : > { %v811_v63 = vmul.f32 0.2, %v765_v50  ;;  %vm803_vm15 = vcmp.ge.f32.partialorder %v765_v50, 0.0 }
 0x1e9   : > { %v812_v1 = vmul.f32 0.2, %v794_v52  ;;  %vm804_vm0 = vcmp.ge.f32.partialorder %v794_v52, 0.0 }
 0x1ea   : > { %v819_v6 = vsel %vm803_vm15, %v765_v50, %v811_v63 }
 0x1eb   : > { %v820_v8 = vsel %vm804_vm0, %v794_v52, %v812_v1 }
 0x1ed   : > { %v767_v53 = vpop.f32.mrf.mxu2 }
 0x1ee   : > { %v768_v56 = vadd.f32 %v767_v53, %v727_v46  ;;  %v796_v57 = vpop.f32.mrf.mxu3 }
 0x1ef   : > { %v797_v60 = vadd.f32 %v796_v57, %v727_v46 }
 0x1f0   : > { %vm805_vm13 = vcmp.ge.f32.partialorder %v768_v56, 0.0  ;;  %v813_v62 = vmul.f32 0.2, %v768_v56 }
 0x1f1   : > { %vm806_vm14 = vcmp.ge.f32.partialorder %v797_v60, 0.0  ;;  %v814_v0 = vmul.f32 0.2, %v797_v60 }
 0x1f2   : > { %v821_v2 = vsel %vm805_vm13, %v768_v56, %v813_v62 }
 0x1f3   : > { %855 = vmatpush.msrb.mxu0 %v821_v2  ;;  %v822_v4 = vsel %vm806_vm14, %v797_v60, %v814_v0 }
 0x1f4   : > { %878 = vmatpush.msrb.mxu1 %v822_v4 }
 0x1f5   : > { %856 = vmatpush.msrb.mxu0 %v819_v6 }
 0x1f6   : > { %879 = vmatpush.msrb.mxu1 %v820_v8 }
 0x1f7   : > { %857 = vmatpush.msrb.mxu0 %v817_v10 }
 0x1f8   : > { %880 = vmatpush.msrb.mxu1 %v818_v11 }
 0x1f9   : > { %858 = vmatpush.msrb.mxu0 %v815_v13 }
 0x1fa   : > { %881 = vmatpush.msrb.mxu1 %v816_v14  ;;  %1115 = vmatmul.msk.f32.vlgmr.msrb.gmra.mxu0 %vm606_vm4, %v823_v12 }
 0x1fb   : > { %1117 = vmatmul.msk.f32.vlgmr.msrb.gmra.mxu1 %vm606_vm4, %v823_v12 }
 0x202   : > { %1116 = vmatmul.msk.f32.gmra.mxu0 %vm606_vm4, %v824_v15 }
 0x203   : > { %1118 = vmatmul.msk.f32.gmra.mxu1 %vm606_vm4, %v824_v15  ;;  %vm908_vm4 = vcmask 130048  }
 0x277   : > { %v860_v16 = vpop.f32.mrf.mxu0 }
 0x278   : > { %v883_v17 = vpop.f32.mrf.mxu1  ;;  %v861_v19 = vadd.f32 %v860_v16, %v830_v18 }
 0x279   : > { %v884_v21 = vadd.f32 %v883_v17, %v830_v18 }
 0x27a   : > { %v893_v27 = vmul.f32 0.2, %v861_v19  ;;  %vm889_vm8 = vcmp.ge.f32.partialorder %v861_v19, 0.0 }
 0x27b   : > { %v894_v29 = vmul.f32 0.2, %v884_v21  ;;  %vm890_vm9 = vcmp.ge.f32.partialorder %v884_v21, 0.0 }
 0x27c   : > { %v897_v33 = vsel %vm889_vm8, %v861_v19, %v893_v27 }
 0x27d   : > { %v898_v34 = vsel %vm890_vm9, %v884_v21, %v894_v29 }
 0x27f   : > { %v863_v22 = vpop.f32.mrf.mxu0 }
 0x280   : > { %v864_v23 = vadd.f32 %v863_v22, %v835_v20  ;;  %v886_v24 = vpop.f32.mrf.mxu1 }
 0x281   : > { %v887_v25 = vadd.f32 %v886_v24, %v835_v20 }
 0x282   : > { %vm891_vm6 = vcmp.ge.f32.partialorder %v864_v23, 0.0  ;;  %v895_v26 = vmul.f32 0.2, %v864_v23 }
 0x283   : > { %vm892_vm7 = vcmp.ge.f32.partialorder %v887_v25, 0.0  ;;  %v896_v28 = vmul.f32 0.2, %v887_v25 }
 0x284   : > { %v899_v30 = vsel %vm891_vm6, %v864_v23, %v895_v26 }
 0x285   : > { %926 = vmatpush.msrb.mxu2 %v899_v30  ;;  %v900_v31 = vsel %vm892_vm7, %v887_v25, %v896_v28 }
 0x286   : > { %946 = vmatpush.msrb.mxu3 %v900_v31 }
 0x287   : > { %927 = vmatpush.msrb.mxu2 %v897_v33 }
 0x288   : > { %947 = vmatpush.msrb.mxu3 %v898_v34  ;;  %1119 = vmatmul.msk.f32.vlgmr.msrb.gmra.mxu2 %vm908_vm4, %v901_v32 }
 0x289   : > { %1120 = vmatmul.msk.f32.vlgmr.msrb.gmra.mxu3 %vm908_vm4, %v901_v32 }
 0x30b   : > { %v929_v35 = vpop.f32.mrf.mxu2 }
 0x30c   : > { %v949_v37 = vpop.f32.mrf.mxu3  ;;  %v930_v38 = vadd.f32 %v929_v35, %v906_v36 }
 0x30d   : > { %v950_v39 = vadd.f32 %v949_v37, %v906_v36 }
 0x30f   : > { %1159 = vtanh.f32 %v950_v39 }
 0x310   : > { %1161 = vtanh.f32 %v930_v38 }
 0x315   : > { %v1160_v40 = vpop.eup %1159 }
 0x316   : > { %v956_v41 = vrot.slane %v1160_v40, 4  ;;  %v1162_v42 = vpop.eup %1161 }
 0x318   : > { %v958_v43 = vsel %vm957_vm10, %v1162_v42, %v956_v41 }
 0x319   : > { %960 = vst [vmem:[%s507_s29] sm:$0x77] %v958_v43 }
 0x31a PF: > { %s22_s23 = sadd.s32 1, %s1185_s23   ;;  %s1404_s21 = smov %s1181_s22 }
 0x31b   : > { %p19_p5 = scmp.ge.s32.totalorder %s22_s23, 4   ;;  %s1405_s22 = smov %s1407_s24 }
 0x31d   :  { %21 = sbr.rel (!%p19_p5) target bundleno = 2 (0x2), region = 107 }

</bundles_post_ra>
